<compile_context>
chip_gen: v7x
topology: tpu7x:2x2x1
jax: 0.10.0
libtpu: 0.0.40
codegen_flags: <defaults>
</compile_context>

<pallas_src>
import concurrent.futures as _cf
import functools

import jax
import jax.numpy as jnp
import numpy as np
from jax import lax
from jax.experimental import pallas as pl
from jax.experimental.pallas import tpu as pltpu

ALPHA = 0.25   # focal alpha (hard-coded in the reference forward)
GAMMA = 2.0    # focal gamma (hard-coded in the reference forward; used as square)

try:  # prefer the compiled solver; the pure-python fallback is O(n^3) interpreted
    from scipy.optimize import linear_sum_assignment as _scipy_lsa
except Exception:  # pragma: no cover
    _scipy_lsa = None


def _round_up(x: int, m: int) -> int:
    return ((x + m - 1) // m) * m


def _pick_tq(Q: int):
    """Query tile: single tile up to 512 rows (minimal padding), else the largest
    multiple-of-8 divisor of round_up(Q, 8) that is <= 512."""
    q8 = _round_up(Q, 8)
    if q8 <= 512:
        return q8, q8
    for cand in range(512, 7, -8):
        if q8 % cand == 0:
            return cand, q8
    return 256, _round_up(Q, 256)  # unreachable (8 always divides q8)


def _cost_kernel(sizes_ref, lhs_ref, pgeo_ref, rhs_ref, tgeo_ref, c_ref, *, tm, cb):
    b = pl.program_id(0)
    j = pl.program_id(2)
    valid = (j * tm) < sizes_ref[b]

    @pl.when(valid)
    def _():
        # ---- MXU: focal class cost + quadratic Smooth-L1 of the 4 normalized
        #      coords + the KFL "+1" constant, all folded into one f32 matmul.
        acc = jnp.dot(lhs_ref[0], rhs_ref[0], preferred_element_type=jnp.float32)

        pg = pgeo_ref[0]                              # [TQ, 5] (A, B, C, vol, ang)
        tg = tgeo_ref[0]                              # [5, TM]
        pa, pbv, pcv, pvol, pang = [pg[:, k:k + 1] for k in range(5)]
        ta, tbv, tcv, tvol, tang = [tg[k:k + 1, :] for k in range(5)]

        # ---- angle Smooth-L1 (beta=1), cost_bbox folded into the constants.
        # TODO(synk): exact SmoothLoss(match=True) source not provided; standard
        # smooth-L1 (beta=1, sum over coords) assumed.
        d = jnp.abs(pang - tang)
        sl1a = jnp.where(d < 1.0, (0.5 * cb) * d * d, cb * d - 0.5 * cb)

        # ---- KFIoU via Kalman fusion determinant identity (4x-covariance units,
        #      so vol_new = vol_p*vol_t*rsqrt(det(Sp+St)) with no 0.25 factor).
        # TODO(synk): exact KFLoss(match=True) source not provided; cost = 1-3*KFIoU.
        sa = pa + ta
        sb = pbv + tbv
        sc = pcv + tcv
        det_sum = jnp.maximum(sa * sc - sb * sb, 1e-12)
        vol_new = (pvol * tvol) * lax.rsqrt(det_sum)
        denom = jnp.maximum(pvol + tvol - vol_new, 1e-12)
        r0 = pl.reciprocal(denom, approx=True)        # EUP slot
        r = r0 * (2.0 - denom * r0)                   # one NR step -> ~f32 accurate
        kf = (vol_new * (3.0 * cb)) * r

        c_ref[0] = (acc + sl1a - kf).astype(c_ref.dtype)

    @pl.when(jnp.logical_not(valid))
    def _():
        # Tile entirely past this batch's targets: skip the heavy math.
        c_ref[...] = jnp.zeros(c_ref.shape, c_ref.dtype)


def _hungarian(cost):
    """Host-side linear sum assignment (numpy fallback; mimics scipy)."""
    cost = np.asarray(cost, dtype=np.float64)
    transposed = False
    if cost.shape[0] > cost.shape[1]:
        cost = cost.T
        transposed = True
    n, m = cost.shape  # n <= m
    INF = float("inf")
    u = [0.0] * (n + 1)
    v = [0.0] * (m + 1)
    p = [0] * (m + 1)
    way = [0] * (m + 1)
    for i in range(1, n + 1):
        p[0] = i
        j0 = 0
        minv = [INF] * (m + 1)
        used = [False] * (m + 1)
        while True:
            used[j0] = True
            i0 = p[j0]
            delta = INF
            j1 = 0
            for j in range(1, m + 1):
                if not used[j]:
                    cur = cost[i0 - 1, j - 1] - u[i0] - v[j]
                    if cur < minv[j]:
                        minv[j] = cur
                        way[j] = j0
                    if minv[j] < delta:
                        delta = minv[j]
                        j1 = j
            for j in range(m + 1):
                if used[j]:
                    u[p[j]] += delta
                    v[j] -= delta
                else:
                    minv[j] -= delta
            j0 = j1
            if p[j0] == 0:
                break
        while True:
            j1 = way[j0]
            p[j0] = p[j1]
            j0 = j1
            if j0 == 0:
                break
    rows, cols = [], []
    for j in range(1, m + 1):
        if p[j] != 0:
            rows.append(p[j] - 1)
            cols.append(j - 1)
    rows = np.asarray(rows, dtype=np.int64)
    cols = np.asarray(cols, dtype=np.int64)
    order = np.argsort(rows)
    rows, cols = rows[order], cols[order]
    if transposed:
        rows, cols = cols, rows
        order = np.argsort(rows)
        rows, cols = rows[order], cols[order]
    return rows, cols


def _lsa(cost):
    if _scipy_lsa is not None:
        r, c = _scipy_lsa(cost)
        return np.asarray(r), np.asarray(c)
    return _hungarian(cost)


def hungarian_matcher(outputs, targets, cost_class=1.0, cost_bbox=1.0):
    assert cost_class != 0 or cost_bbox != 0, "all costs cant be 0"
    pred_logits = jnp.asarray(outputs["pred_logits"], jnp.float32)
    pred_boxes = jnp.asarray(outputs["pred_boxes"], jnp.float32)
    B, Q, C = pred_logits.shape
    sizes = [int(t["boxes"].shape[0]) for t in targets]
    assert len(sizes) == B
    S_max = max(max(sizes), 1)
    cc = float(cost_class)
    cb = float(cost_bbox)

    # ---- tiles: minimal query padding, lane-dense target axis, safe VMEM caps.
    TQ, Q_pad = _pick_tq(Q)
    S128 = _round_up(S_max, 128)
    TM = S128 if S128 <= 512 else 512
    S_pad = _round_up(S_max, TM)
    # v7x has 2 TensorCores: make sure the grid has >= 2 blocks.
    if B * (Q_pad // TQ) * (S_pad // TM) == 1:
        if S_pad >= 256:
            TM = 128
        elif Q_pad >= 16 and (Q_pad // 2) % 8 == 0:
            TQ = Q_pad // 2

    # ---- focal classification source (stable softplus identities), weight folded.
    prob = jax.nn.sigmoid(pred_logits)
    neg = (1.0 - ALPHA) * (prob * prob) * jax.nn.softplus(pred_logits)
    pos = ALPHA * ((1.0 - prob) ** 2) * jax.nn.softplus(-pred_logits)
    cls_src = cc * (pos - neg)                                    # [B, Q, C]

    # ---- MXU LHS: [ class | -cb*p4 | 1 | cb*0.5*||p4||^2 ]   (K = C + 6)
    p4 = pred_boxes[..., :4]
    lhs = jnp.concatenate([
        cls_src,
        (-cb) * p4,
        jnp.ones((B, Q, 1), jnp.float32),
        (0.5 * cb) * jnp.sum(p4 * p4, axis=-1, keepdims=True),
    ], axis=-1)
    K = C + 6
    if Q_pad > Q:
        lhs = jnp.pad(lhs, ((0, 0), (0, Q_pad - Q), (0, 0)))

    # ---- per-query KFIoU geometry (4x-covariance units): (A, B, C, vol, ang*pi)
    def geo(w, h, ang):
        c = jnp.cos(ang)
        s = jnp.sin(ang)
        w2 = w * w
        h2 = h * h
        return jnp.stack([c * c * w2 + s * s * h2,
                          s * c * (w2 - h2),
                          s * s * w2 + c * c * h2,
                          w * h,
                          ang], axis=-1)

    pgeo = geo(pred_boxes[..., 2], pred_boxes[..., 3],
               pred_boxes[..., 4] * jnp.pi)                       # [B, Q, 5]
    if Q_pad > Q:
        pgeo = jnp.pad(pgeo, ((0, 0), (0, Q_pad - Q), (0, 0)))

    # ---- per-batch RHS [K, S_pad] (one-hot | t4 | cb*(0.5||t||^2+1) | 1) and
    #      transposed target geometry [5, S_pad]; zero padding is benign.
    class_range = jnp.arange(C, dtype=jnp.int32)[:, None]
    rhs_rows, tgeo_rows = [], []
    for t in targets:
        lab = jnp.asarray(t["labels"], jnp.int32)
        box = jnp.asarray(t["boxes"], jnp.float32)
        s = int(lab.shape[0])
        oh = (class_range == lab[None, :]).astype(jnp.float32)    # [C, s]
        t4 = box[:, :4].T                                         # [4, s]
        row_c = (cb * (0.5 * jnp.sum(box[:, :4] ** 2, axis=-1) + 1.0))[None, :]
        row_1 = jnp.ones((1, s), jnp.float32)
        rhs_b = jnp.concatenate([oh, t4, row_c, row_1], axis=0)   # [K, s]
        rhs_rows.append(jnp.pad(rhs_b, ((0, 0), (0, S_pad - s))))
        tg = geo(box[:, 2], box[:, 3], box[:, 4] * jnp.pi).T      # [5, s]
        tgeo_rows.append(jnp.pad(tg, ((0, 0), (0, S_pad - s))))
    rhs = jnp.stack(rhs_rows)                                     # [B, K, S_pad]
    tgeo = jnp.stack(tgeo_rows)                                   # [B, 5, S_pad]

    # pad K to a sublane-friendly multiple of 8 (zero rows contribute nothing)
    K_pad = _round_up(K, 8)
    if K_pad > K:
        lhs = jnp.pad(lhs, ((0, 0), (0, 0), (0, K_pad - K)))
        rhs = jnp.pad(rhs, ((0, 0), (0, K_pad - K), (0, 0)))

    sizes_arr = jnp.asarray(sizes, jnp.int32)                     # scalar prefetch

    kernel = functools.partial(_cost_kernel, tm=TM, cb=cb)
    grid = (B, Q_pad // TQ, S_pad // TM)
    cost = pl.pallas_call(
        kernel,
        out_shape=jax.ShapeDtypeStruct((B, Q_pad, S_pad), jnp.float32),
        grid_spec=pltpu.PrefetchScalarGridSpec(
            num_scalar_prefetch=1,
            grid=grid,
            in_specs=[
                pl.BlockSpec((1, TQ, K_pad), lambda b, i, j, sz: (b, i, 0)),
                pl.BlockSpec((1, TQ, 5), lambda b, i, j, sz: (b, i, 0)),
                pl.BlockSpec((1, K_pad, TM), lambda b, i, j, sz: (b, 0, j)),
                pl.BlockSpec((1, 5, TM), lambda b, i, j, sz: (b, 0, j)),
            ],
            out_specs=pl.BlockSpec((1, TQ, TM), lambda b, i, j, sz: (b, i, j)),
        ),
        compiler_params=pltpu.CompilerParams(
            dimension_semantics=("parallel", "parallel", "parallel"),
            vmem_limit_bytes=32 * 1024 * 1024),
    )(sizes_arr, lhs, pgeo, rhs, tgeo)

    # ---- host: transfer only the valid [Q, s_b] slices; Hungarian on host.
    # TODO(synk): linear_sum_assignment is inherently sequential -> host solver.
    blocks = jax.device_get([cost[b, :Q, :s] for b, s in enumerate(sizes)])
    if _scipy_lsa is not None and len(blocks) > 1:
        with _cf.ThreadPoolExecutor(max_workers=min(8, len(blocks))) as ex:
            results = list(ex.map(_lsa, blocks))
    else:
        results = [_lsa(np.asarray(blk)) for blk in blocks]
    indices = [(jnp.asarray(i, jnp.int32), jnp.asarray(j, jnp.int32))
               for i, j in results]
    return indices, cost


if __name__ == "__main__":
    B, Q, C = 2, 16, 8
    sizes = [3, 5]

    keys = jax.random.split(jax.random.PRNGKey(0), 2 + 2 * len(sizes))
    pred_logits = jax.random.normal(keys[0], (B, Q, C), dtype=jnp.float32)
    pred_boxes = jax.random.uniform(keys[1], (B, Q, 5), dtype=jnp.float32,
                                    minval=0.05, maxval=0.95)
    targets = []
    for bi, s in enumerate(sizes):
        labels = jax.random.randint(keys[2 + 2 * bi], (s,), 0, C, dtype=jnp.int32)
        boxes = jax.random.uniform(keys[3 + 2 * bi], (s, 5), dtype=jnp.float32,
                                   minval=0.05, maxval=0.95)
        targets.append({"labels": labels, "boxes": boxes})

    outputs = {"pred_logits": pred_logits, "pred_boxes": pred_boxes}
    indices, cost = hungarian_matcher(outputs, targets,
                                      cost_class=1.0, cost_bbox=1.0)
    jax.block_until_ready(cost)

    C_np = np.asarray(cost)
    ok = True
    for b, ((i, j), s) in enumerate(zip(indices, sizes)):
        block = C_np[b, :Q, :s]
        ok = ok and bool(np.isfinite(block).all())
        ok = ok and (len(i) == len(j) == min(Q, s))
    if ok:
        print("KERNEL_OK")
</pallas_src>

<mosaic_0001>
module attributes {stable_mosaic.version = 11 : i64} {
  func.func @_cost_kernel(%arg0: i32, %arg1: i32, %arg2: i32, %arg3: memref<2xi32, #tpu.memory_space<smem>>, %arg4: memref<1x16x16xf32, #tpu.memory_space<vmem>>, %arg5: memref<1x16x5xf32, #tpu.memory_space<vmem>>, %arg6: memref<1x16x128xf32, #tpu.memory_space<vmem>>, %arg7: memref<1x5x128xf32, #tpu.memory_space<vmem>>, %arg8: memref<1x16x128xf32, #tpu.memory_space<vmem>>) attributes {dimension_semantics = [#tpu.dimension_semantics<parallel>, #tpu.dimension_semantics<parallel>, #tpu.dimension_semantics<parallel>], iteration_bounds = array<i64: 2, 1, 1>, scalar_prefetch = 1 : i64, scratch_operands = 0 : i64, tpu.core_type = #tpu.core_type<tc>, window_params = [{transform_indices = @transform_0, window_bounds = array<i64: 1, 16, 16>}, {transform_indices = @transform_1, window_bounds = array<i64: 1, 16, 5>}, {transform_indices = @transform_2, window_bounds = array<i64: 1, 16, 128>}, {transform_indices = @transform_3, window_bounds = array<i64: 1, 5, 128>}, {transform_indices = @transform_4, window_bounds = array<i64: 1, 16, 128>}]} {
    %c128_i32 = arith.constant 128 : i32
    %0 = arith.muli %arg2, %c128_i32 : i32
    %1 = arith.index_cast %arg0 : i32 to index
    %2 = memref.load %arg3[%1] : memref<2xi32, #tpu.memory_space<smem>>
    %3 = arith.cmpi slt, %0, %2 : i32
    %4 = arith.extui %3 : i1 to i32
    %c0_i32 = arith.constant 0 : i32
    %5 = arith.cmpi ne, %4, %c0_i32 : i32
    scf.if %5 {
      %c0 = arith.constant 0 : index
      %c0_1 = arith.constant 0 : index
      %c0_2 = arith.constant 0 : index
      %9 = vector.load %arg4[%c0, %c0_1, %c0_2] : memref<1x16x16xf32, #tpu.memory_space<vmem>>, vector<1x16x16xf32>
      %10 = vector.shape_cast %9 : vector<1x16x16xf32> to vector<16x16xf32>
      %c0_3 = arith.constant 0 : index
      %c0_4 = arith.constant 0 : index
      %c0_5 = arith.constant 0 : index
      %11 = vector.load %arg6[%c0_3, %c0_4, %c0_5] : memref<1x16x128xf32, #tpu.memory_space<vmem>>, vector<1x16x128xf32>
      %12 = vector.shape_cast %11 : vector<1x16x128xf32> to vector<16x128xf32>
      %cst = arith.constant dense<0.000000e+00> : vector<16x128xf32>
      %13 = tpu.matmul %10, %12, %cst {dimension_numbers = #tpu.dot_dimension_numbers<[1], [0], [0], [1], [0, 0, 1, 1], [], []>} : vector<16x16xf32>, vector<16x128xf32>, vector<16x128xf32> -> vector<16x128xf32>
      %c0_6 = arith.constant 0 : index
      %c0_7 = arith.constant 0 : index
      %c0_8 = arith.constant 0 : index
      %14 = vector.load %arg5[%c0_6, %c0_7, %c0_8] : memref<1x16x5xf32, #tpu.memory_space<vmem>>, vector<1x16x5xf32>
      %15 = vector.shape_cast %14 : vector<1x16x5xf32> to vector<16x5xf32>
      %c0_9 = arith.constant 0 : index
      %c0_10 = arith.constant 0 : index
      %c0_11 = arith.constant 0 : index
      %16 = vector.load %arg7[%c0_9, %c0_10, %c0_11] : memref<1x5x128xf32, #tpu.memory_space<vmem>>, vector<1x5x128xf32>
      %17 = vector.shape_cast %16 : vector<1x5x128xf32> to vector<5x128xf32>
      %18 = vector.extract_strided_slice %15 {offsets = [0, 0], sizes = [16, 1], strides = [1, 1]} : vector<16x5xf32> to vector<16x1xf32>
      %19 = vector.extract_strided_slice %15 {offsets = [0, 1], sizes = [16, 1], strides = [1, 1]} : vector<16x5xf32> to vector<16x1xf32>
      %20 = vector.extract_strided_slice %15 {offsets = [0, 2], sizes = [16, 1], strides = [1, 1]} : vector<16x5xf32> to vector<16x1xf32>
      %21 = vector.extract_strided_slice %15 {offsets = [0, 3], sizes = [16, 1], strides = [1, 1]} : vector<16x5xf32> to vector<16x1xf32>
      %22 = vector.extract_strided_slice %15 {offsets = [0, 4], sizes = [16, 1], strides = [1, 1]} : vector<16x5xf32> to vector<16x1xf32>
      %23 = vector.extract_strided_slice %17 {offsets = [0, 0], sizes = [1, 128], strides = [1, 1]} : vector<5x128xf32> to vector<1x128xf32>
      %24 = vector.extract_strided_slice %17 {offsets = [1, 0], sizes = [1, 128], strides = [1, 1]} : vector<5x128xf32> to vector<1x128xf32>
      %25 = vector.extract_strided_slice %17 {offsets = [2, 0], sizes = [1, 128], strides = [1, 1]} : vector<5x128xf32> to vector<1x128xf32>
      %26 = vector.extract_strided_slice %17 {offsets = [3, 0], sizes = [1, 128], strides = [1, 1]} : vector<5x128xf32> to vector<1x128xf32>
      %27 = vector.extract_strided_slice %17 {offsets = [4, 0], sizes = [1, 128], strides = [1, 1]} : vector<5x128xf32> to vector<1x128xf32>
      %28 = vector.broadcast %22 : vector<16x1xf32> to vector<16x128xf32>
      %29 = vector.broadcast %27 : vector<1x128xf32> to vector<16x128xf32>
      %30 = arith.subf %28, %29 : vector<16x128xf32>
      %31 = math.absf %30 : vector<16x128xf32>
      %cst_12 = arith.constant 1.000000e+00 : f32
      %32 = vector.broadcast %cst_12 : f32 to vector<16x128xf32>
      %33 = arith.cmpf olt, %31, %32 : vector<16x128xf32>
      %cst_13 = arith.constant 5.000000e-01 : f32
      %34 = vector.broadcast %cst_13 : f32 to vector<16x128xf32>
      %35 = arith.mulf %34, %31 : vector<16x128xf32>
      %36 = arith.mulf %35, %31 : vector<16x128xf32>
      %cst_14 = arith.constant 1.000000e+00 : f32
      %37 = vector.broadcast %cst_14 : f32 to vector<16x128xf32>
      %38 = arith.mulf %37, %31 : vector<16x128xf32>
      %cst_15 = arith.constant 5.000000e-01 : f32
      %39 = vector.broadcast %cst_15 : f32 to vector<16x128xf32>
      %40 = arith.subf %38, %39 : vector<16x128xf32>
      %41 = arith.select %33, %36, %40 : vector<16x128xi1>, vector<16x128xf32>
      %42 = vector.broadcast %18 : vector<16x1xf32> to vector<16x128xf32>
      %43 = vector.broadcast %23 : vector<1x128xf32> to vector<16x128xf32>
      %44 = arith.addf %42, %43 : vector<16x128xf32>
      %45 = vector.broadcast %19 : vector<16x1xf32> to vector<16x128xf32>
      %46 = vector.broadcast %24 : vector<1x128xf32> to vector<16x128xf32>
      %47 = arith.addf %45, %46 : vector<16x128xf32>
      %48 = vector.broadcast %20 : vector<16x1xf32> to vector<16x128xf32>
      %49 = vector.broadcast %25 : vector<1x128xf32> to vector<16x128xf32>
      %50 = arith.addf %48, %49 : vector<16x128xf32>
      %51 = arith.mulf %44, %50 : vector<16x128xf32>
      %52 = arith.mulf %47, %47 : vector<16x128xf32>
      %53 = arith.subf %51, %52 : vector<16x128xf32>
      %cst_16 = arith.constant 9.99999996E-13 : f32
      %54 = vector.broadcast %cst_16 : f32 to vector<16x128xf32>
      %55 = arith.maximumf %53, %54 : vector<16x128xf32>
      %56 = vector.broadcast %21 : vector<16x1xf32> to vector<16x128xf32>
      %57 = vector.broadcast %26 : vector<1x128xf32> to vector<16x128xf32>
      %58 = arith.mulf %56, %57 : vector<16x128xf32>
      %59 = math.rsqrt %55 : vector<16x128xf32>
      %60 = arith.mulf %58, %59 : vector<16x128xf32>
      %61 = vector.broadcast %21 : vector<16x1xf32> to vector<16x128xf32>
      %62 = vector.broadcast %26 : vector<1x128xf32> to vector<16x128xf32>
      %63 = arith.addf %61, %62 : vector<16x128xf32>
      %64 = arith.subf %63, %60 : vector<16x128xf32>
      %cst_17 = arith.constant 9.99999996E-13 : f32
      %65 = vector.broadcast %cst_17 : f32 to vector<16x128xf32>
      %66 = arith.maximumf %64, %65 : vector<16x128xf32>
      %67 = tpu.reciprocal %66 {approx = true} : vector<16x128xf32> -> vector<16x128xf32>
      %68 = arith.mulf %66, %67 : vector<16x128xf32>
      %cst_18 = arith.constant 2.000000e+00 : f32
      %69 = vector.broadcast %cst_18 : f32 to vector<16x128xf32>
      %70 = arith.subf %69, %68 : vector<16x128xf32>
      %71 = arith.mulf %67, %70 : vector<16x128xf32>
      %cst_19 = arith.constant 3.000000e+00 : f32
      %72 = vector.broadcast %cst_19 : f32 to vector<16x128xf32>
      %73 = arith.mulf %60, %72 : vector<16x128xf32>
      %74 = arith.mulf %73, %71 : vector<16x128xf32>
      %75 = arith.addf %13, %41 : vector<16x128xf32>
      %76 = arith.subf %75, %74 : vector<16x128xf32>
      %c0_20 = arith.constant 0 : index
      %c0_21 = arith.constant 0 : index
      %c0_22 = arith.constant 0 : index
      %77 = vector.load %arg8[%c0_20, %c0_21, %c0_22] : memref<1x16x128xf32, #tpu.memory_space<vmem>>, vector<1x16x128xf32>
      %78 = vector.shape_cast %77 : vector<1x16x128xf32> to vector<16x128xf32>
      %79 = vector.shape_cast %76 : vector<16x128xf32> to vector<1x16x128xf32>
      tpu.vector_store %arg8[%c0_20, %c0_21, %c0_22], %79 {strides = array<i32>} : memref<1x16x128xf32, #tpu.memory_space<vmem>>, vector<1x16x128xf32>,
    } else {
    }
    %true = arith.constant true
    %6 = arith.xori %3, %true : i1
    %7 = arith.extui %6 : i1 to i32
    %c0_i32_0 = arith.constant 0 : i32
    %8 = arith.cmpi ne, %7, %c0_i32_0 : i32
    scf.if %8 {
      %cst = arith.constant 0.000000e+00 : f32
      %9 = vector.broadcast %cst : f32 to vector<1x16x128xf32>
      %c0 = arith.constant 0 : index
      %c0_1 = arith.constant 0 : index
      %c0_2 = arith.constant 0 : index
      %10 = vector.load %arg8[%c0, %c0_1, %c0_2] : memref<1x16x128xf32, #tpu.memory_space<vmem>>, vector<1x16x128xf32>
      tpu.vector_store %arg8[%c0, %c0_1, %c0_2], %9 {strides = array<i32>} : memref<1x16x128xf32, #tpu.memory_space<vmem>>, vector<1x16x128xf32>,
    } else {
    }
    return
  }
  func.func @transform_0(%arg0: i32, %arg1: i32, %arg2: i32, %arg3: memref<2xi32, #tpu.memory_space<smem>>) -> (i32, i32, i32) {
    %c0_i32 = arith.constant 0 : i32
    %c0_i32_0 = arith.constant 0 : i32
    return %arg0, %arg1, %c0_i32 : i32, i32, i32
  }
  func.func @transform_1(%arg0: i32, %arg1: i32, %arg2: i32, %arg3: memref<2xi32, #tpu.memory_space<smem>>) -> (i32, i32, i32) {
    %c0_i32 = arith.constant 0 : i32
    %c0_i32_0 = arith.constant 0 : i32
    return %arg0, %arg1, %c0_i32 : i32, i32, i32
  }
  func.func @transform_2(%arg0: i32, %arg1: i32, %arg2: i32, %arg3: memref<2xi32, #tpu.memory_space<smem>>) -> (i32, i32, i32) {
    %c0_i32 = arith.constant 0 : i32
    %c0_i32_0 = arith.constant 0 : i32
    return %arg0, %c0_i32, %arg2 : i32, i32, i32
  }
  func.func @transform_3(%arg0: i32, %arg1: i32, %arg2: i32, %arg3: memref<2xi32, #tpu.memory_space<smem>>) -> (i32, i32, i32) {
    %c0_i32 = arith.constant 0 : i32
    %c0_i32_0 = arith.constant 0 : i32
    return %arg0, %c0_i32, %arg2 : i32, i32, i32
  }
  func.func @transform_4(%arg0: i32, %arg1: i32, %arg2: i32, %arg3: memref<2xi32, #tpu.memory_space<smem>>) -> (i32, i32, i32) {
    %c0_i32 = arith.constant 0 : i32
    return %arg0, %arg1, %arg2 : i32, i32, i32
  }
}

</mosaic_0001>

<bundles_post_ra>
// kernel: tpu_custom_call.1
= control target key start
LH: loop header
LB: loop body
LE: loop exit
PB: predicated region body
PF: predicated region fallthrough
CT: control target
= control target key end

     0   :  { %s1112_s0 = inlined_call_operand.vmem [shape: s32[2], index: 0, kind: input, shape index: {}]   ;;  %s1113_s1 = inlined_call_operand.vmem [shape: f32[2,16,16], index: 1, kind: input, shape index: {}]   ;;  %s1114_s2 = inlined_call_operand.vmem [shape: f32[2,16,5], index: 2, kind: input, shape index: {}]   ;;  %s1115_s3 = inlined_call_operand.vmem [shape: f32[2,16,128], index: 3, kind: input, shape index: {}]   ;;  %s1116_s4 = inlined_call_operand.vmem [shape: f32[2,5,128], index: 4, kind: input, shape index: {}]   ;;  %s1117_s5 = inlined_call_operand.hbm [shape: f32[2,16,128], index: 5, kind: output, shape index: {}]  }
   0x1   :  { %s10_s20 = sshll.u32 %s1112_s0, 4  ;;  %s11_s20 = int_to_ptr.vmem [resolvable:$true] %s10_s20 }
   0x2   :  { %s832_s21 = scalar_lea.vmem %s11_s20, 16  ;;  %p837_p1 = scmp.lt.s32.totalorder %s11_s20, %s11_s20 }
   0x3   :  { %p833_p0 = scmp.ne.s32.totalorder %s11_s20, %s832_s21  ;;  %p838_p2 = scmp.lt.s32.totalorder %s832_s21, %s832_s21 }
   0x5   :  { %p839_p3 = por %p838_p2, %p837_p1 }
   0x7   :  { %p840_p4 = pnand %p839_p3, %p833_p0 }
   0x9   :  { %843 = shalt.err (!%p840_p4)  }
   0xa   :  { %s926_s22 = smov [#allocation3]  }
   0xb   :  { %13 = dma.vmem_to_smem %s11_s20, 16, %s926_s22, [#allocation2] }
   0xc   :  { %896 = dma.done.wait [#allocation2], 16 }
   0xd   :  { %897 = vsyncadd [#allocation2], 4294967280 }
   0xe   :  { %15 = sfence }
   0xf   :  { %16 = vsyncpa [#allocation5], 0 }
  0x10   :  { %18 = vsyncpa [#allocation5 + $0x1], 0  ;;  %s969_s23 = smov 0   ;;  %s971_s24 = smov 0  }
  0x11   :  { %s973_s0 = smov 0   ;;  %s975_s25 = smov 0  }
  0x12   :  { %s977_s26 = smov 0   ;;  %s979_s27 = smov 0  }
  0x13 LB: > { %1121 = sst [smem:[#allocation8_spill]] %s920_s26  ;;  %s708_s28 = sadd.s32 4294967295, %s924_s27   ;;  %s924_s27 = sphi %s979_s27, %s24_s27   ;;  %s920_s26 = sphi %s977_s26, %s1127_s26   ;;  %s916_s25 = sphi %s975_s25, %s1126_s25   ;;  %s912_s0 = sphi %s973_s0, %s1130_s0   ;;  %s908_s24 = sphi %s971_s24, %s1129_s24   ;;  %s904_s23 = sphi %s969_s23, %s1128_s23  }
  0x14   : > { %s709_s29 = sadd.s32 4294967294, %s924_s27   ;;  %s43_s30 = sadd.s32 1, %s920_s26 }
  0x15   : > { %s166_s6 = sadd.s32 1, %s912_s0  ;;  %p45_p5 = scmp.ge.s32.totalorder %s43_s30, 2 }
  0x16   : > { %p176_p6 = scmp.ne.s32.totalorder %s912_s0, %s908_s24  ;;  %p177_p7 = scmp.eq.s32.totalorder %s708_s28, 1 }
  0x17   : > { %p182_p8 = scmp.ne.s32.totalorder %s908_s24, %s904_s23  ;;  %s1132_s30 = smov (%p45_p5, %s43_s30), 0 }
  0x18   : > { %1122 = sst [smem:[#allocation9_spill]] %s1132_s30  ;;  %p1009_p9 = por %p177_p7, %p176_p6 }
  0x19   : > { %p183_p10 = scmp.eq.s32.totalorder %s709_s29, 1  ;;  %s159_s8 = ssub.s32 %s920_s26, %s1132_s30 }
  0x1a   : > { %p712_p11 = scmp.ge.s32.totalorder %s924_s27, 1  ;;  %p164_p12 = scmp.eq.s32.totalorder %s159_s8, 0 }
  0x1b   : > { %p1016_p13 = por %p183_p10, %p182_p8  ;;  %p248_p0 = scmp.lt.s32.totalorder %s924_s27, 3 }
  0x1c   : > { %s1022_s10 = scalar_select %p164_p12, %s912_s0, %s166_s6  }
  0x1d   : > { %p249_p1 = pnand %p712_p11, %p248_p0 }
  0x1e   : > { %s1119_s11 = sand.u32 (!%p249_p1), 1, %s908_s24   ;;  %p303_p2 = scmp.lt.s32.totalorder (!%p249_p1), %s916_s25, 1 }
  0x1f   : > { %252 = sbr.rel (%p249_p1) target bundleno = 303 (0x12f), region = 36  ;;  %s713_s12 = sshll.u32 (!%p249_p1), %s1119_s11, 4 }
  0x20   : > { %s1029_s13 = sld [smem:[#allocation3 + %s916_s25]] (!%p249_p1)  ;;  %s1046_s26 = scalar_lea.vmem (!%p249_p1), [#allocation4], %s713_s12 }
  0x26   : > { %s304_s14 = scalar_select %p303_p2, %s916_s25, 1 }
  0x27   : > { %p722_p3 = scmp.le.s32.totalorder %s1029_s13, 0 }
  0x28   : > { %s734_s15 = sshll.u32 %s304_s14, 4  ;;  %s720_s16 = sshll.u32 %s304_s14, 3  ;;  %vm465_vm0 = vcmask (!%p722_p3), 130048   ;;  %v927_v4 = vmov (!%p722_p3), 1   ;;  %v928_v6 = vmov (!%p722_p3), 0   ;;  %v929_v9 = vmov (!%p722_p3), 2  }
  0x29   : > { %s310_s19 = scalar_lea.vmem %s1113_s1, %s734_s15  ;;  %s320_s22 = scalar_lea.vmem %s1114_s2, %s734_s15  ;;  %818 = vset.pattern.permute.xlu1 (!%p722_p3), %v927_v4  ;;  %817 = vset.pattern.permute.xlu0 (!%p722_p3), %v928_v6  ;;  %v930_v10 = vmov (!%p722_p3), 3   ;;  %v931_v11 = vmov (!%p722_p3), 4   ;;  %v361_v12 = vlaneseq (!%p722_p3) }
  0x2a   : > { %s329_s6 = scalar_lea.vmem %s1115_s3, %s734_s15  ;;  %s1044_s11 = scalar_lea.vmem %s1116_s4, %s720_s16  ;;  %v344_v2 = vld [vmem:[%s310_s19] sm:$0xff] (!%p722_p3)  ;;  %v349_v7 = vld [vmem:[%s320_s22 + $0x8] sm:$0xff] (!%p722_p3) }
  0x2b   : > { %343 = sbr.rel (%p722_p3) target bundleno = 268 (0x10c), region = 40  ;;  %v346_v0 = vld [vmem:[%s329_s6] sm:$0xff] (!%p722_p3)  ;;  %v347_v1 = vld [vmem:[%s329_s6 + $0x8] sm:$0xff] (!%p722_p3)  ;;  %746 = vmatprep.mubr.msk.f32.mxu0 (!%p722_p3), %vm465_vm0, %v344_v2  ;;  %v362_v15 = vshrl.u32 (!%p722_p3), %v361_v12, 7 }
  0x2c   : > { %v749_v3 = vpack.c.bf16 (!%p722_p3), %v347_v1, %v346_v0  ;;  %v348_v5 = vld [vmem:[%s320_s22] sm:$0xff] (!%p722_p3)  ;;  %v345_v8 = vld [vmem:[%s310_s19 + $0x8] sm:$0xff] (!%p722_p3) }
  0x2d   : > { %394 = vperm.xlu1 (!%p722_p3), %818, %v348_v5   ;;  %380 = vperm.xlu0 (!%p722_p3), %817, %v348_v5   ;;  %v403_v17 = vsub.s32 (!%p722_p3), 1, %v362_v15  ;;  %v389_v18 = vsub.s32 (!%p722_p3), 0, %v362_v15  ;;  %v417_v20 = vsub.s32 (!%p722_p3), 2, %v362_v15  ;;  %v350_v21 = vld [vmem:[%s1044_s11] sm:$0x1f] (!%p722_p3)  ;;  %v439_v41 = vsub.s32 (!%p722_p3), 3, %v362_v15 }
  0x2e   : > { %750 = vmatprep.subr.bf16.mxu0 (!%p722_p3), %v749_v3  ;;  %v363_v58 = vsub.s32 (!%p722_p3), 4, %v362_v15 }
  0x2f   : > { %752 = vmatpush3.bf16.msra.mxu0 (!%p722_p3), %v749_v3  ;;  %v404_v22 = vrot.slane (!%p722_p3), %v350_v21, %v403_v17  ;;  %v390_v23 = vrot.slane (!%p722_p3), %v350_v21, %v389_v18  ;;  %v418_v24 = vrot.slane (!%p722_p3), %v350_v21, %v417_v20  ;;  %v440_v42 = vrot.slane (!%p722_p3), %v350_v21, %v439_v41 }
  0x30   : > { %v364_v59 = vrot.slane (!%p722_p3), %v350_v21, %v363_v58 }
  0x31   : > { %398 = vperm.xlu1 (!%p722_p3), %818, %v349_v7   ;;  %384 = vperm.xlu0 (!%p722_p3), %817, %v349_v7  }
  0x32   : > { %747 = vmatmul.mubr.msk.f32.vlgmr.msra.gmra.mrb[0].mxu0 %vm465_vm0, %v345_v8 }
  0x35   : > { %820 = vset.pattern.permute.xlu1 %v929_v9  ;;  %819 = vset.pattern.permute.xlu0 %v929_v9 }
  0x36   : > { %412 = vperm.xlu1 %820, %v349_v7   ;;  %408 = vperm.xlu0 %819, %v348_v5  }
  0x3a   : > { %821 = vset.pattern.permute.xlu1 %v930_v10  ;;  %822 = vset.pattern.permute.xlu0 %v930_v10 }
  0x3b   : > { %430 = vperm.xlu1 %821, %v348_v5   ;;  %434 = vperm.xlu0 %822, %v349_v7  }
  0x3f   : > { %823 = vset.pattern.permute.xlu1 %v931_v11 }
  0x40   : > { %353 = vperm.xlu1 %823, %v348_v5  }
  0x44   : > { %358 = vperm.xlu1 %823, %v349_v7  }
  0xac   : > { %v395_v13 = vpop.permute.xlu1 %394  ;;  %v381_v14 = vpop.permute.xlu0 %380 }
  0xad   : > { %v405_v30 = vadd.f32 %v404_v22, %v395_v13  ;;  %v391_v31 = vadd.f32 %v390_v23, %v381_v14 }
  0xaf   : > { %v423_v35 = vmul.f32 %v405_v30, %v405_v30 }
  0xb0   : > { %v399_v16 = vpop.permute.xlu1 %398  ;;  %v385_v19 = vpop.permute.xlu0 %384 }
  0xb1   : > { %v406_v27 = vadd.f32 %v404_v22, %v399_v16  ;;  %v392_v28 = vadd.f32 %v390_v23, %v385_v19 }
  0xb3   : > { %v424_v33 = vmul.f32 %v406_v27, %v406_v27 }
  0xb5   : > { %v413_v25 = vpop.permute.xlu1 %412  ;;  %v409_v26 = vpop.permute.xlu0 %408 }
  0xb6   : > { %v420_v29 = vadd.f32 %v418_v24, %v413_v25  ;;  %v419_v32 = vadd.f32 %v418_v24, %v409_v26 }
  0xb8   : > { %v422_v34 = vmul.f32 %v420_v29, %v392_v28  ;;  %v421_v36 = vmul.f32 %v419_v32, %v391_v31 }
  0xba   : > { %v426_v37 = vsub.f32 %v422_v34, %v424_v33  ;;  %v425_v38 = vsub.f32 %v421_v36, %v423_v35  ;;  %v435_v43 = vpop.permute.xlu0 %434  ;;  %v431_v44 = vpop.permute.xlu1 %430 }
  0xbb   : > { %v442_v45 = vmul.f32 %v440_v42, %v435_v43  ;;  %v441_v47 = vmul.f32 %v440_v42, %v431_v44  ;;  %v448_v50 = vadd.f32 %v440_v42, %v435_v43  ;;  %v447_v52 = vadd.f32 %v440_v42, %v431_v44 }
  0xbc   : > { %v428_v39 = vmax.f32 %v426_v37, 1e-12  ;;  %v427_v40 = vmax.f32 %v425_v38, 1e-12 }
  0xbe   : > { %824 = vrsqrt.f32 %v428_v39 }
  0xbf   : > { %826 = vrsqrt.f32 %v427_v40  ;;  %v354_v57 = vpop.permute.xlu1 %353 }
  0xc0   : > { %v365_v62 = vsub.f32 %v354_v57, %v364_v59 }
  0xc2   : > { %v367_v3 = vand.u32 2147483647, %v365_v62 }
  0xc3   : > { %v359_v60 = vpop.permute.xlu1 %358 }
  0xc4   : > { %v366_v61 = vsub.f32 %v359_v60, %v364_v59  ;;  %v371_v7 = vmul.f32 0.5, %v367_v3  ;;  %v723_v11 = vadd.f32 -0.5, %v367_v3  ;;  %vm369_vm2 = vcmp.lt.f32.partialorder %v367_v3, 1.0 }
  0xc6   : > { %v368_v1 = vand.u32 2147483647, %v366_v61  ;;  %v373_v14 = vmul.f32 %v371_v7, %v367_v3 }
  0xc8   : > { %v825_v46 = vpop.eup %824  ;;  %v372_v5 = vmul.f32 0.5, %v368_v1  ;;  %v724_v10 = vadd.f32 -0.5, %v368_v1  ;;  %vm370_vm1 = vcmp.lt.f32.partialorder %v368_v1, 1.0  ;;  %v377_v21 = vsel %vm369_vm2, %v373_v14, %v723_v11 }
  0xc9   : > { %v827_v48 = vpop.eup %826  ;;  %v446_v49 = vmul.f32 %v825_v46, %v442_v45 }
  0xca   : > { %v445_v51 = vmul.f32 %v827_v48, %v441_v47  ;;  %v374_v9 = vmul.f32 %v372_v5, %v368_v1 }
  0xcb   : > { %v450_v53 = vsub.f32 %v448_v50, %v446_v49  ;;  %v462_v12 = vmul.f32 3.0, %v446_v49 }
  0xcc   : > { %v449_v54 = vsub.f32 %v447_v52, %v445_v51  ;;  %v461_v15 = vmul.f32 3.0, %v445_v51  ;;  %v378_v17 = vsel %vm370_vm1, %v374_v9, %v724_v10 }
  0xcd   : > { %v452_v55 = vmax.f32 %v450_v53, 1e-12 }
  0xce   : > { %v451_v56 = vmax.f32 %v449_v54, 1e-12 }
  0xcf   : > { %828 = vrcp.f32 %v452_v55 }
  0xd0   : > { %830 = vrcp.f32 %v451_v56 }
  0xd9   : > { %v829_v63 = vpop.eup %828 }
  0xda   : > { %v831_v0 = vpop.eup %830  ;;  %v456_v2 = vmul.f32 %v829_v63, %v452_v55 }
  0xdb   : > { %v455_v4 = vmul.f32 %v831_v0, %v451_v56 }
  0xdc   : > { %v458_v6 = vsub.f32 2.0, %v456_v2 }
  0xdd   : > { %v457_v8 = vsub.f32 2.0, %v455_v4 }
  0xde   : > { %v460_v13 = vmul.f32 %v829_v63, %v458_v6 }
  0xdf   : > { %v459_v16 = vmul.f32 %v831_v0, %v457_v8 }
  0xe0   : > { %v464_v19 = vmul.f32 %v462_v12, %v460_v13 }
  0xe1   : > { %v463_v23 = vmul.f32 %v461_v15, %v459_v16 }
 0x105   : > { %v748_v18 = vpop.f32.mrb[0].mxu0 }
 0x106   : > { %v544_v20 = vadd.f32 %v748_v18, %v378_v17  ;;  %v538_v22 = vpop.f32.mrb[1].mxu0 }
 0x107   : > { %v539_v24 = vadd.f32 %v538_v22, %v377_v21 }
 0x108   : > { %v548_v25 = vsub.f32 %v544_v20, %v464_v19 }
 0x109   : > { %v547_v26 = vsub.f32 %v539_v24, %v463_v23 }
 0x10a   : > { %550 = vst [vmem:[%s1046_s26 + $0x8] sm:$0xff] %v548_v25 }
 0x10b   : > { %549 = vst [vmem:[%s1046_s26] sm:$0xff] %v547_v26 }
 0x10c PF: > { %p728_p4 = scmp.gt.s32.totalorder %s1029_s13, 0 }
 0x10d   : > { %v932_v27 = vmov (!%p728_p4), 0.0  }
 0x10e   : > { %554 = sbr.rel (%p728_p4) target bundleno = 277 (0x115), region = 44  ;;  %555 = vst [vmem:[%s1046_s26] sm:$0xff] (!%p728_p4), %v932_v27  ;;  %556 = vst [vmem:[%s1046_s26 + $0x8] sm:$0xff] (!%p728_p4), %v932_v27 }
 0x115 PF: > { %s737_s30 = sshll.u32 %s916_s25, 8  ;;  %s574_s15 = sshll.u32 %s1046_s26, 4  ;;  %s1062_s15 = int_to_ptr.vmem [resolvable:$true] %s574_s15 }
 0x116   : > { %s1059_s14 = scalar_lea.hbm %s1117_s5, %s737_s30  ;;  %s1125_s13 = sand.u32 1, %s908_s24  }
 0x117   : > { %s1066_s16 = scalar_lea.sflag [#allocation5], %s1125_s13  ;;  %s844_s17 = scalar_lea.vmem %s1062_s15, 256 }
 0x118   : > { %p845_p5 = scmp.ne.s32.totalorder %s1062_s15, %s844_s17  ;;  %s933_s25 = smov [#allocation4]  }
 0x119   : > { %s848_s18 = sshll.u32 %s933_s25, 4  ;;  %s849_s18 = int_to_ptr.vmem [resolvable:$false] %s848_s18 }
 0x11a   : > { %p846_p6 = pnand %p845_p5, %p1009_p9  ;;  %s850_s19 = scalar_lea.vmem %s849_s18, 512 }
 0x11b   : > { %p851_p8 = scmp.lt.s32.totalorder %s1062_s15, %s849_s18  ;;  %p852_p10 = scmp.lt.s32.totalorder %s850_s19, %s844_s17 }
 0x11c   : > { %p847_p7 = pneg %p846_p6 }
 0x11d   : > { %p853_p11 = por %p852_p10, %p851_p8 }
 0x11f   : > { %p854_p12 = pnand %p853_p11, %p847_p7 }
 0x121   : > { %857 = shalt.err (!%p854_p12)
}
 0x122   : > { %s858_s26 = scalar_lea.hbm %s1059_s14, 256  ;;  %s862_s22 = scalar_lea.hbm %s1117_s5, 512 }
 0x123   : > { %p859_p0 = scmp.ne.s32.totalorder %s1059_s14, %s858_s26  ;;  %p863_p3 = scmp.lt.u32.totalorder %s1059_s14, %s1117_s5 }
 0x124   : > { %p864_p4 = scmp.lt.u32.totalorder %s862_s22, %s858_s26  ;;  %p866_p6 = scmp.lt.u32.totalorder %s858_s26, %s1059_s14 }
 0x125   : > { %p860_p1 = pnand %p859_p0, %p1009_p9 }
 0x126   : > { %p865_p5 = por %p864_p4, %p863_p3 }
 0x127   : > { %p861_p2 = pneg %p860_p1 }
 0x128   : > { %p867_p7 = por %p866_p6, %p865_p5 }
 0x12a   : > { %p868_p8 = pnand %p867_p7, %p861_p2 }
 0x12c   : > { %871 = shalt.err (!%p868_p8)
}
 0x12d   : > { %s934_s6 = smov 128   ;;  %s935_s8 = smov 8  }
 0x12e   : > { %753 = dma.vmem_to_hbm [thread:$0]  (%p1009_p9), %s1062_s15, 256, %s1059_s14, %s1066_s16, %s934_s6, %s934_s6, %s935_s8  }
 0x12f PF: > { %p759_p10 = scmp.ge.s32.totalorder %s924_s27, 2  ;;  %s589_s30 = sand.u32 1, %s904_s23  }
 0x130   : > { %s590_s11 = scalar_lea.sflag [#allocation5], %s589_s30 }
 0x131   : > { %p756_p11 = pnand %p759_p10, %p1016_p13 }
 0x133   : > { %899 = dma.done.wait (!%p756_p11), %s590_s11, 256  }
 0x134   : > { %901 = vsyncadd (!%p756_p11), %s590_s11, 4294967040  ;;  %s24_s27 = sadd.s32 1, %s924_s27   ;;  %s1126_s25 = sld [smem:[#allocation8_spill]] }
 0x135   : > { %p21_p12 = scmp.ge.s32.totalorder %s24_s27, 4   ;;  %s1127_s26 = sld [smem:[#allocation9_spill]] }
 0x136   : > { %s1128_s23 = smov %s908_s24  ;;  %s1129_s24 = smov %s912_s0 }
 0x137   : > { %s1130_s0 = smov %s1022_s10  ;;  %23 = sbr.rel (!%p21_p12) target bundleno = 19 (0x13), region = 88 }
 0x13e   :  { %595 = vsyncpa [#allocation5], 1 }
 0x13f   :  { %597 = vsyncpa [#allocation5 + $0x1], 1 }

</bundles_post_ra>
